<compile_context>
chip_gen: v6e
topology: v6e:2x2x1
jax: 0.10.0
libtpu: 0.0.40
codegen_flags: <defaults>
</compile_context>

<pallas_src>
import functools

import jax
import jax.numpy as jnp
from jax.experimental import pallas as pl
from jax.experimental.pallas import tpu as pltpu

LANE = 128           # TPU lane width (last-dim tile)
BATCH_ALIGN = 16     # bf16 sublane packing -> keep batch tiles 16-aligned
MAX_TILE_B = 1024    # biggest batch tile (keeps double-buffered VMEM < ~2 MiB)
NEG_BIG = -1e30      # bias for padded action lanes; exp() underflows to 0


def _round_up(x, m):
    return (x + m - 1) // m * m


def policy_kernel(x_ref, w1_ref, b1_ref, w2_ref, b2_ref, w3_ref, b3_ref, out_ref):
    # x tile: bf16 (TILE_B, s_size); weights bf16; biases f32.
    x = x_ref[...]

    # fc1 + ReLU   (bf16 MXU matmul, f32 accumulate, f32 elementwise)
    h1 = jnp.dot(x, w1_ref[...], preferred_element_type=jnp.float32) + b1_ref[...]
    h1 = jnp.maximum(h1, 0.0)

    # fc2 + ReLU
    h2 = jnp.dot(h1.astype(jnp.bfloat16), w2_ref[...],
                 preferred_element_type=jnp.float32) + b2_ref[...]
    h2 = jnp.maximum(h2, 0.0)

    # fc3 -> logits over a full 128-lane action axis. Padded lanes carry a
    # -1e30 bias (and zero weight columns), so they contribute exp(...) == 0
    # to the softmax denominator; no in-kernel masking needed.
    logits = jnp.dot(h2.astype(jnp.bfloat16), w3_ref[...],
                     preferred_element_type=jnp.float32) + b3_ref[...]

    # numerically-stable softmax over dim=1 (the padded action axis)
    m = jnp.max(logits, axis=-1, keepdims=True)       # XLU reduce
    e = jnp.exp(logits - m)                           # EUP
    denom = jnp.sum(e, axis=-1, keepdims=True)        # XLU reduce
    out_ref[...] = e * pl.reciprocal(denom, approx=True)   # EUP recip, VALU mul


@functools.partial(jax.jit, static_argnames=("tile_b",))
def policy_forward(x, params, *, tile_b=None):
    """softmax(fc3(relu(fc2(relu(fc1(x)))))) for x: [B, s_size] -> [B, a_size]."""
    w1, b1, w2, b2, w3, b3 = params
    B, s_size = x.shape
    a_size = w3.shape[1]

    # ---- layout / dtype prep -------------------------------------------------
    # Lane-dense output: pad action dim to a multiple of 128 (unmasked vst).
    a_pad = _round_up(a_size, LANE)
    w3p = jnp.pad(w3, ((0, 0), (0, a_pad - a_size)))                  # zero cols
    b3p = jnp.pad(b3, ((0, 0), (0, a_pad - a_size)),
                  constant_values=NEG_BIG)                            # kill pads

    # bf16 matmul operands (halves weight/x DMA bytes, feeds MXU natively).
    w1b = w1.astype(jnp.bfloat16)
    w2b = w2.astype(jnp.bfloat16)
    w3b = w3p.astype(jnp.bfloat16)
    xb = x.astype(jnp.bfloat16)

    # ---- batch tiling ---------------------------------------------------------
    if tile_b is None:
        tile_b = min(MAX_TILE_B, _round_up(B, BATCH_ALIGN))
    tile_b = max(BATCH_ALIGN, _round_up(tile_b, BATCH_ALIGN))
    b_pad = _round_up(B, tile_b)
    if b_pad != B:
        xb = jnp.pad(xb, ((0, b_pad - B), (0, 0)))

    grid = (b_pad // tile_b,)

    # Weights/biases: constant block index -> DMA'd once, resident in VMEM
    # across all grid steps.
    def resident(arr):
        return pl.BlockSpec(arr.shape, lambda i: (0, 0))

    out = pl.pallas_call(
        policy_kernel,
        out_shape=jax.ShapeDtypeStruct((b_pad, a_pad), jnp.float32),
        grid=grid,
        in_specs=[
            pl.BlockSpec((tile_b, s_size), lambda i: (i, 0)),  # x tile
            resident(w1b), resident(b1),
            resident(w2b), resident(b2),
            resident(w3b), resident(b3p),
        ],
        out_specs=pl.BlockSpec((tile_b, a_pad), lambda i: (i, 0)),
        compiler_params=pltpu.CompilerParams(
            # batch axis is embarrassingly parallel -> megacore sharding on v7x
            dimension_semantics=("parallel",),
            # tiny per-tile footprint (< 2 MiB double-buffered); 32 MiB is safe
            # on v5e/v6e (128 MiB physical) and v7x (64 MiB physical).
            vmem_limit_bytes=32 * 1024 * 1024,
        ),
    )(xb, w1b, b1, w2b, b2, w3b, b3p)

    # Strip batch + action padding.
    return out[:B, :a_size]


# ---------------------------------------------------------------------------
# Reference / init helpers
# ---------------------------------------------------------------------------
def init_linear(key, fan_in, fan_out):
    # Deterministic init mimicking nn.Linear's U(-1/sqrt(fan_in), 1/sqrt(fan_in)).
    kw, kb = jax.random.split(key)
    bound = 1.0 / jnp.sqrt(float(fan_in))
    w = jax.random.uniform(kw, (fan_in, fan_out), jnp.float32, -bound, bound)
    b = jax.random.uniform(kb, (1, fan_out), jnp.float32, -bound, bound)
    return w, b


def reference_forward_f32(x, params):
    w1, b1, w2, b2, w3, b3 = params
    h1 = jnp.maximum(x @ w1 + b1, 0.0)
    h2 = jnp.maximum(h1 @ w2 + b2, 0.0)
    return jax.nn.softmax(h2 @ w3 + b3, axis=1)


def reference_forward_bf16(x, params):
    # Mirrors the kernel's dtype plan (bf16 matmul operands, f32 accumulate).
    w1, b1, w2, b2, w3, b3 = params
    bf = jnp.bfloat16
    h1 = jnp.maximum(
        jnp.dot(x.astype(bf), w1.astype(bf), preferred_element_type=jnp.float32) + b1, 0.0)
    h2 = jnp.maximum(
        jnp.dot(h1.astype(bf), w2.astype(bf), preferred_element_type=jnp.float32) + b2, 0.0)
    logits = jnp.dot(h2.astype(bf), w3.astype(bf),
                     preferred_element_type=jnp.float32) + b3
    return jax.nn.softmax(logits, axis=1)


if __name__ == "__main__":
    # Pixelcopter-like sizes: s_size=7 obs dims, h_size=32, a_size=2 actions.
    s_size, h_size, a_size = 7, 32, 2

    key = jax.random.PRNGKey(0)
    kx, kx2, k1, k2, k3 = jax.random.split(key, 5)

    w1, b1 = init_linear(k1, s_size, h_size)
    w2, b2 = init_linear(k2, h_size, h_size * 2)
    w3, b3 = init_linear(k3, h_size * 2, a_size)
    params = (w1, b1, w2, b2, w3, b3)

    # ---- small-batch check (matches the original act()/forward usage) -------
    B = 2
    x = jax.random.normal(kx, (B, s_size), jnp.float32)
    probs = jax.block_until_ready(policy_forward(x, params))
    assert probs.shape == (B, a_size)
    assert jnp.allclose(probs, reference_forward_bf16(x, params), atol=1e-2)
    assert jnp.allclose(probs, reference_forward_f32(x, params), atol=3e-2)
    assert jnp.allclose(jnp.sum(probs, axis=1), 1.0, atol=5e-3)

    # ---- batched check: exercises the tiled grid + resident-weight path -----
    Bb = 1024
    xb = jax.random.normal(kx2, (Bb, s_size), jnp.float32)
    probs_b = jax.block_until_ready(policy_forward(xb, params, tile_b=256))
    assert probs_b.shape == (Bb, a_size)
    assert jnp.allclose(probs_b, reference_forward_bf16(xb, params), atol=1e-2)
    assert jnp.allclose(jnp.sum(probs_b, axis=1), 1.0, atol=5e-3)

    print("KERNEL_OK")
</pallas_src>

<mosaic_0001>
module attributes {stable_mosaic.version = 11 : i64} {
  func.func @policy_kernel(%arg0: i32, %arg1: memref<16x7xbf16, #tpu.memory_space<vmem>>, %arg2: memref<7x32xbf16, #tpu.memory_space<vmem>>, %arg3: memref<1x32xf32, #tpu.memory_space<vmem>>, %arg4: memref<32x64xbf16, #tpu.memory_space<vmem>>, %arg5: memref<1x64xf32, #tpu.memory_space<vmem>>, %arg6: memref<64x128xbf16, #tpu.memory_space<vmem>>, %arg7: memref<1x128xf32, #tpu.memory_space<vmem>>, %arg8: memref<16x128xf32, #tpu.memory_space<vmem>>) attributes {dimension_semantics = [#tpu.dimension_semantics<parallel>], iteration_bounds = array<i64: 1>, scalar_prefetch = 0 : i64, scratch_operands = 0 : i64, tpu.core_type = #tpu.core_type<tc>, window_params = [{transform_indices = @transform_0, window_bounds = array<i64: 16, 7>}, {pipeline_mode = #tpu.pipeline_mode<synchronous>, transform_indices = @transform_1, window_bounds = array<i64: 7, 32>}, {pipeline_mode = #tpu.pipeline_mode<synchronous>, transform_indices = @transform_2, window_bounds = array<i64: 1, 32>}, {pipeline_mode = #tpu.pipeline_mode<synchronous>, transform_indices = @transform_3, window_bounds = array<i64: 32, 64>}, {pipeline_mode = #tpu.pipeline_mode<synchronous>, transform_indices = @transform_4, window_bounds = array<i64: 1, 64>}, {pipeline_mode = #tpu.pipeline_mode<synchronous>, transform_indices = @transform_5, window_bounds = array<i64: 64, 128>}, {pipeline_mode = #tpu.pipeline_mode<synchronous>, transform_indices = @transform_6, window_bounds = array<i64: 1, 128>}, {transform_indices = @transform_7, window_bounds = array<i64: 16, 128>}]} {
    %c0 = arith.constant 0 : index
    %c0_0 = arith.constant 0 : index
    %0 = vector.load %arg1[%c0, %c0_0] : memref<16x7xbf16, #tpu.memory_space<vmem>>, vector<16x7xbf16>
    %c0_1 = arith.constant 0 : index
    %c0_2 = arith.constant 0 : index
    %1 = vector.load %arg2[%c0_1, %c0_2] : memref<7x32xbf16, #tpu.memory_space<vmem>>, vector<7x32xbf16>
    %cst = arith.constant dense<0.000000e+00> : vector<16x32xf32>
    %2 = tpu.matmul %0, %1, %cst {dimension_numbers = #tpu.dot_dimension_numbers<[1], [0], [0], [1], [0, 0, 1, 1], [], []>} : vector<16x7xbf16>, vector<7x32xbf16>, vector<16x32xf32> -> vector<16x32xf32>
    %c0_3 = arith.constant 0 : index
    %c0_4 = arith.constant 0 : index
    %3 = vector.load %arg3[%c0_3, %c0_4] : memref<1x32xf32, #tpu.memory_space<vmem>>, vector<1x32xf32>
    %4 = vector.broadcast %3 : vector<1x32xf32> to vector<16x32xf32>
    %5 = arith.addf %2, %4 : vector<16x32xf32>
    %cst_5 = arith.constant 0.000000e+00 : f32
    %6 = vector.broadcast %cst_5 : f32 to vector<16x32xf32>
    %7 = arith.maximumf %5, %6 : vector<16x32xf32>
    %8 = arith.truncf %7 : vector<16x32xf32> to vector<16x32xbf16>
    %c0_6 = arith.constant 0 : index
    %c0_7 = arith.constant 0 : index
    %9 = vector.load %arg4[%c0_6, %c0_7] : memref<32x64xbf16, #tpu.memory_space<vmem>>, vector<32x64xbf16>
    %cst_8 = arith.constant dense<0.000000e+00> : vector<16x64xf32>
    %10 = tpu.matmul %8, %9, %cst_8 {dimension_numbers = #tpu.dot_dimension_numbers<[1], [0], [0], [1], [0, 0, 1, 1], [], []>} : vector<16x32xbf16>, vector<32x64xbf16>, vector<16x64xf32> -> vector<16x64xf32>
    %c0_9 = arith.constant 0 : index
    %c0_10 = arith.constant 0 : index
    %11 = vector.load %arg5[%c0_9, %c0_10] : memref<1x64xf32, #tpu.memory_space<vmem>>, vector<1x64xf32>
    %12 = vector.broadcast %11 : vector<1x64xf32> to vector<16x64xf32>
    %13 = arith.addf %10, %12 : vector<16x64xf32>
    %cst_11 = arith.constant 0.000000e+00 : f32
    %14 = vector.broadcast %cst_11 : f32 to vector<16x64xf32>
    %15 = arith.maximumf %13, %14 : vector<16x64xf32>
    %16 = arith.truncf %15 : vector<16x64xf32> to vector<16x64xbf16>
    %c0_12 = arith.constant 0 : index
    %c0_13 = arith.constant 0 : index
    %17 = vector.load %arg6[%c0_12, %c0_13] : memref<64x128xbf16, #tpu.memory_space<vmem>>, vector<64x128xbf16>
    %cst_14 = arith.constant dense<0.000000e+00> : vector<16x128xf32>
    %18 = tpu.matmul %16, %17, %cst_14 {dimension_numbers = #tpu.dot_dimension_numbers<[1], [0], [0], [1], [0, 0, 1, 1], [], []>} : vector<16x64xbf16>, vector<64x128xbf16>, vector<16x128xf32> -> vector<16x128xf32>
    %c0_15 = arith.constant 0 : index
    %c0_16 = arith.constant 0 : index
    %19 = vector.load %arg7[%c0_15, %c0_16] : memref<1x128xf32, #tpu.memory_space<vmem>>, vector<1x128xf32>
    %20 = vector.broadcast %19 : vector<1x128xf32> to vector<16x128xf32>
    %21 = arith.addf %18, %20 : vector<16x128xf32>
    %cst_17 = arith.constant dense<0xFF800000> : vector<16xf32>
    %22 = vector.multi_reduction <maximumf>, %21, %cst_17 [1] : vector<16x128xf32> to vector<16xf32>
    %23 = vector.shape_cast %22 : vector<16xf32> to vector<16x1xf32>
    %24 = vector.broadcast %23 : vector<16x1xf32> to vector<16x128xf32>
    %25 = arith.subf %21, %24 : vector<16x128xf32>
    %26 = math.exp %25 : vector<16x128xf32>
    %cst_18 = arith.constant dense<0.000000e+00> : vector<16xf32>
    %27 = vector.multi_reduction <add>, %26, %cst_18 [1] : vector<16x128xf32> to vector<16xf32>
    %28 = vector.shape_cast %27 : vector<16xf32> to vector<16x1xf32>
    %29 = tpu.reciprocal %28 {approx = true} : vector<16x1xf32> -> vector<16x1xf32>
    %30 = vector.broadcast %29 : vector<16x1xf32> to vector<16x128xf32>
    %31 = arith.mulf %26, %30 : vector<16x128xf32>
    %c0_19 = arith.constant 0 : index
    %c0_20 = arith.constant 0 : index
    %32 = vector.load %arg8[%c0_19, %c0_20] : memref<16x128xf32, #tpu.memory_space<vmem>>, vector<16x128xf32>
    tpu.vector_store %arg8[%c0_19, %c0_20], %31 {strides = array<i32>} : memref<16x128xf32, #tpu.memory_space<vmem>>, vector<16x128xf32>,
    return
  }
  func.func @transform_0(%arg0: i32) -> (i32, i32) {
    %c0_i32 = arith.constant 0 : i32
    %c0_i32_0 = arith.constant 0 : i32
    return %arg0, %c0_i32 : i32, i32
  }
  func.func @transform_1(%arg0: i32) -> (i32, i32) {
    %c0_i32 = arith.constant 0 : i32
    %c0_i32_0 = arith.constant 0 : i32
    %c0_i32_1 = arith.constant 0 : i32
    return %c0_i32, %c0_i32_0 : i32, i32
  }
  func.func @transform_2(%arg0: i32) -> (i32, i32) {
    %c0_i32 = arith.constant 0 : i32
    %c0_i32_0 = arith.constant 0 : i32
    %c0_i32_1 = arith.constant 0 : i32
    return %c0_i32, %c0_i32_0 : i32, i32
  }
  func.func @transform_3(%arg0: i32) -> (i32, i32) {
    %c0_i32 = arith.constant 0 : i32
    %c0_i32_0 = arith.constant 0 : i32
    %c0_i32_1 = arith.constant 0 : i32
    return %c0_i32, %c0_i32_0 : i32, i32
  }
  func.func @transform_4(%arg0: i32) -> (i32, i32) {
    %c0_i32 = arith.constant 0 : i32
    %c0_i32_0 = arith.constant 0 : i32
    %c0_i32_1 = arith.constant 0 : i32
    return %c0_i32, %c0_i32_0 : i32, i32
  }
  func.func @transform_5(%arg0: i32) -> (i32, i32) {
    %c0_i32 = arith.constant 0 : i32
    %c0_i32_0 = arith.constant 0 : i32
    %c0_i32_1 = arith.constant 0 : i32
    return %c0_i32, %c0_i32_0 : i32, i32
  }
  func.func @transform_6(%arg0: i32) -> (i32, i32) {
    %c0_i32 = arith.constant 0 : i32
    %c0_i32_0 = arith.constant 0 : i32
    %c0_i32_1 = arith.constant 0 : i32
    return %c0_i32, %c0_i32_0 : i32, i32
  }
  func.func @transform_7(%arg0: i32) -> (i32, i32) {
    %c0_i32 = arith.constant 0 : i32
    %c0_i32_0 = arith.constant 0 : i32
    return %arg0, %c0_i32 : i32, i32
  }
}

</mosaic_0001>

<bundles_post_ra>
// kernel: policy_forward.1
= control target key start
LH: loop header
LB: loop body
LE: loop exit
PB: predicated region body
PF: predicated region fallthrough
CT: control target
= control target key end

     0   :  { %vm46_vm0 = vcmask 1042432   ;;  %vm47_vm1 = vcmask 1043456   ;;  %v343_v0 = vmov 0.0   ;;  %v344_v2 = vmov 65535   ;;  %s425_s1 = inlined_call_operand.vmem [shape: bf16[7,32], index: 1, kind: input, shape index: {}]   ;;  %s426_s0 = inlined_call_operand.vmem [shape: bf16[16,7], index: 0, kind: input, shape index: {}]   ;;  %s427_s3 = inlined_call_operand.vmem [shape: bf16[32,64], index: 3, kind: input, shape index: {}]   ;;  %s428_s5 = inlined_call_operand.vmem [shape: bf16[64,128], index: 5, kind: input, shape index: {}]   ;;  %s429_s2 = inlined_call_operand.vmem [shape: f32[1,32], index: 2, kind: input, shape index: {}]   ;;  %s430_s4 = inlined_call_operand.vmem [shape: f32[1,64], index: 4, kind: input, shape index: {}]   ;;  %s431_s6 = inlined_call_operand.vmem [shape: f32[1,128], index: 6, kind: input, shape index: {}]   ;;  %s432_s7 = inlined_call_operand.vmem [shape: f32[16,128], index: 7, kind: output, shape index: {}]  }
   0x1   :  { %299 = vmatprep.subr.bf16.mxu1 %v343_v0  ;;  %v29_v1 = vld [vmem:[%s425_s1] sm:$0xf]  ;;  %v48_v3 = vsel %vm46_vm0, 4294967295, %v344_v2  ;;  %313 = vmatprep.subr.bf16.mxu0 %v343_v0  ;;  %vm345_vm2 = vmmov 0   ;;  %vm42_vm3 = vcmask 56320   ;;  %v329_v7 = vld [vmem:[%s427_s3 + $0x8] sm:$0xff]  }
   0x2   :  { %v49_v4 = vsel %vm47_vm1, %v48_v3, 0  ;;  %301 = vmatprep.mubr.msk.bf16.mxu1 %vm345_vm2, %v343_v0  ;;  %321 = vmatprep.mubr.msk.bf16.mxu0 %vm345_vm2, %v343_v0  ;;  %v328_v6 = vld [vmem:[%s426_s0] sm:$0xff]   ;;  %v331_v9 = vld [vmem:[%s428_s5 + $0x18] sm:$0xff]   ;;  %vm120_vm4 = vcmask 261120   ;;  %v332_v20 = vld [vmem:[%s428_s5 + $0x10] sm:$0xff]   ;;  %vm207_vm5 = vcmask 523264  }
   0x3   :  { %v51_v5 = vand.u32 %v49_v4, %v29_v1  ;;  %v330_v8 = vld [vmem:[%s427_s3] sm:$0xff]   ;;  %314 = vmatpush3.bf16.msra.mxu0 %v331_v9  ;;  %v333_v21 = vld [vmem:[%s428_s5 + $0x8] sm:$0xff]  }
   0x4   :  { %315 = vmatprep.subr.bf16.mxu0 %v343_v0  ;;  %v276_v10 = vld [vmem:[%s429_s2] ss:$0 sm:$0xff] }
   0x5   :  { %300 = vmatpush3.bf16.msra.mxu1 %v51_v5  ;;  %v334_v22 = vld [vmem:[%s428_s5] sm:$0xff]  }
   0x6   :  { %305 = vmatprep.subr.bf16.mxu1 %v343_v0  ;;  %v279_v23 = vld [vmem:[%s430_s4] ss:$0 sm:$0xff] }
   0x7   :  { %316 = vmatpush3.bf16.msra.mxu0 %v332_v20  ;;  %v283_v33 = vld [vmem:[%s431_s6] ss:$0 sm:$0xff] }
   0x8   :  { %302 = vmatmul.mubr.msk.bf16.vlgmr.msra.gmra.mxu1 %vm42_vm3, %v328_v6  ;;  %317 = vmatprep.subr.bf16.mxu0 %v343_v0 }
   0x9   :  { %309 = vmatprep.mubr.msk.bf16.mxu1 %vm345_vm2, %v343_v0  ;;  %306 = vmatpush3.bf16.msra.mxu1 %v329_v7 }
   0xa   :  { %307 = vmatprep.subr.bf16.mxu1 %v343_v0 }
   0xb   :  { %318 = vmatpush3.bf16.msra.mxu0 %v333_v21 }
   0xc   :  { %319 = vmatprep.subr.bf16.mxu0 %v343_v0 }
   0xd   :  { %308 = vmatpush3.bf16.msra.mxu1 %v330_v8 }
   0xf   :  { %320 = vmatpush3.bf16.msra.mxu0 %v334_v22 }
  0xc8   :  { %v87_v11 = vpop.f32.mrf.mxu1 }
  0xc9   :  { %v88_v13 = vadd.f32 %v276_v10, %v87_v11 }
  0xca   :  { %v303_v12 = vpop.f32.mrf.mxu1 }
  0xcb   :  { %v94_v17 = vmax.f32 %v88_v13, 0.0 }
  0xcc   :  { %v90_v14 = vpop.f32.mrf.mxu1 }
  0xcd   :  { %v91_v15 = vadd.f32 %v276_v10, %v90_v14 }
  0xce   :  { %v304_v16 = vpop.f32.mrf.mxu1 }
  0xcf   :  { %v95_v18 = vmax.f32 %v91_v15, 0.0 }
  0xd1   :  { %v96_v19 = vpack.c.bf16 %v95_v18, %v94_v17 }
  0xd3   :  { %310 = vmatmul.mubr.msk.bf16.vlgmr.msra.gmra.mxu1 %vm120_vm4, %v96_v19 }
 0x193   :  { %v158_v24 = vpop.f32.mrf.mxu1 }
 0x194   :  { %v159_v26 = vadd.f32 %v279_v23, %v158_v24 }
 0x195   :  { %v311_v25 = vpop.f32.mrf.mxu1 }
 0x196   :  { %v165_v30 = vmax.f32 %v159_v26, 0.0 }
 0x197   :  { %v161_v27 = vpop.f32.mrf.mxu1 }
 0x198   :  { %v162_v28 = vadd.f32 %v279_v23, %v161_v27 }
 0x199   :  { %v312_v29 = vpop.f32.mrf.mxu1 }
 0x19a   :  { %v166_v31 = vmax.f32 %v162_v28, 0.0 }
 0x19c   :  { %v167_v32 = vpack.c.bf16 %v166_v31, %v165_v30 }
 0x19e   :  { %322 = vmatmul.mubr.msk.bf16.vlgmr.msra.gmra.mxu0 %vm207_vm5, %v167_v32 }
 0x25e   :  { %v245_v34 = vpop.f32.mrf.mxu0 }
 0x25f   :  { %v246_v35 = vadd.f32 %v283_v33, %v245_v34 }
 0x260   :  { %v323_v36 = vpop.f32.mrf.mxu0 }
 0x261   :  { %252 = vmax.xlane.f32.xlu0 %v246_v35 }
 0x262   :  { %v248_v37 = vpop.f32.mrf.mxu0 }
 0x263   :  { %v249_v38 = vadd.f32 %v283_v33, %v248_v37 }
 0x264   :  { %v324_v39 = vpop.f32.mrf.mxu0 }
 0x265   :  { %254 = vmax.xlane.f32.xlu0 %v249_v38 }
 0x2ea   :  { %v253_v40 = vpop.xlane.xlu0 %252 }
 0x2eb   :  { %v256_v41 = vsub.f32 %v246_v35, %v253_v40 }
 0x2ed   :  { %v258_v42 = vmul.f32 1.442695, %v256_v41 }
 0x2ee   :  { %v255_v43 = vpop.xlane.xlu0 %254 }
 0x2ef   :  { %335 = vpow2.f32 %v258_v42  ;;  %v257_v44 = vsub.f32 %v249_v38, %v255_v43 }
 0x2f1   :  { %v260_v45 = vmul.f32 1.442695, %v257_v44 }
 0x2f3   :  { %337 = vpow2.f32 %v260_v45 }
 0x2fc   :  { %v336_v46 = vpop.eup %335 }
 0x2fd   :  { %262 = vadd.xlane.f32.xlu1 %v336_v46 }
 0x300   :  { %v338_v47 = vpop.eup %337 }
 0x301   :  { %264 = vadd.xlane.f32.xlu1 %v338_v47 }
 0x386   :  { %v263_v48 = vpop.xlane.xlu1 %262 }
 0x387   :  { %339 = vrcp.f32 %v263_v48 }
 0x38a   :  { %v265_v49 = vpop.xlane.xlu1 %264 }
 0x38b   :  { %341 = vrcp.f32 %v265_v49 }
 0x394   :  { %v340_v50 = vpop.eup %339 }
 0x395   :  { %v268_v51 = vmul.f32 %v340_v50, %v336_v46 }
 0x397   :  { %270 = vst [vmem:[%s432_s7] sm:$0xff] %v268_v51 }
 0x398   :  { %v342_v52 = vpop.eup %341 }
 0x399   :  { %v269_v53 = vmul.f32 %v342_v52, %v338_v47 }
 0x39b   :  { %271 = vst [vmem:[%s432_s7 + $0x8] sm:$0xff] %v269_v53 }

</bundles_post_ra>
